<compile_context>
chip_gen: v5e
topology: v5e:2x2
jax: 0.10.0
libtpu: 0.0.40
codegen_flags: <defaults>
</compile_context>

<pallas_src>
import functools
import math

import jax
import jax.numpy as jnp
from jax.experimental import pallas as pl
from jax.experimental.pallas import tpu as pltpu


def _round_up(x, m):
    return ((x + m - 1) // m) * m


def _cluster_kernel(x_ref, w_ref, gamma_ref, beta_ref, o_ref, *, l_valid, eps):
    # x_ref:     (bt, C*L)   flattened, UNPADDED input rows
    # w_ref:     (C*L, Lo)   banded conv weight ('same' zero-padding folded in)
    # gamma_ref: (1, Lo)     LayerNorm weight (lane-padded with zeros)
    # beta_ref:  (1, Lo)     LayerNorm bias   (lane-padded with zeros)
    # o_ref:     (bt, Lo)    lane-dense output tile
    lo = o_ref.shape[-1]

    # Conv1d(C -> 1, 'same') as a single MXU matmul (contraction over C*L).
    conv = jnp.dot(x_ref[...], w_ref[...], preferred_element_type=jnp.float32)

    # LayerNorm over the valid lanes, one pass: var = E[x^2] - mean^2.
    inv_n = 1.0 / float(l_valid)
    if l_valid == lo:
        s1 = jnp.sum(conv, axis=-1, keepdims=True)
        s2 = jnp.sum(conv * conv, axis=-1, keepdims=True)
    else:
        lane = jax.lax.broadcasted_iota(jnp.int32, conv.shape, 1)
        masked = jnp.where(lane < l_valid, conv, 0.0)
        s1 = jnp.sum(masked, axis=-1, keepdims=True)
        s2 = jnp.sum(masked * masked, axis=-1, keepdims=True)
    mean = s1 * inv_n
    var = s2 * inv_n - mean * mean
    normed = (conv - mean) * jax.lax.rsqrt(var + eps)

    y = jnp.tanh(normed * gamma_ref[...] + beta_ref[...])
    # TODO(synk): nn.Dropout(0.3) is identity at inference; training-mode
    # stochastic masking is not implemented here.
    o_ref[...] = y.astype(o_ref.dtype)


def community_local_cluster(x, conv_w, conv_b, ln_gamma, ln_beta, *, eps=1e-5):
    """Forward of the PyTorch module. Returns (B, 1, node_length).

    The Conv1d bias is constant over the LayerNorm axis, so it cancels exactly
    in (conv - mean); it is intentionally not applied in the kernel.
    """
    del conv_b  # mathematically a no-op under the following LayerNorm
    B, C, L = x.shape
    K = conv_w.shape[-1]
    pad = K // 2

    Lo = _round_up(L, 128)          # lane-dense output width (unmasked stores)
    in_dtype = x.dtype
    itemsize = x.dtype.itemsize

    # ---- VMEM budget & batch-tile sizing --------------------------------
    try:
        vmem_cap = int(pltpu.get_tpu_info().vmem_capacity_bytes)
    except Exception:
        vmem_cap = 64 * 1024 * 1024
    vmem_limit = int(vmem_cap) * 3 // 4            # leave Mosaic headroom

    w_bytes = itemsize * C * L * Lo                # resident banded weight
    per_row = itemsize * C * L + 4 * Lo            # streamed x row + out row
    stream_budget = max(vmem_limit - w_bytes - (8 << 20), 4 << 20)
    bt_cap = max(8, stream_budget // (2 * per_row))  # double-buffered streams
    if B <= 8:
        bt = B                                     # block dim == full array dim
    else:
        bt = int(min(B, bt_cap, 512))
        bt = max(8, (bt // 8) * 8)
    Bp = _round_up(B, bt)

    # ---- Layout plumbing, done once in the wrapper -----------------------
    # Banded (Toeplitz) conv weight with zero-padding folded in:
    #   W[c, p, l] = conv_w[c, p - l + pad]  when the tap is in range, else 0.
    # TODO(synk): for very large node_length, tile W over an Lo grid axis so
    # the resident block stays within VMEM (matters on v7x's 64 MiB core).
    p_idx = jnp.arange(L)[:, None]                 # input position
    l_idx = jnp.arange(Lo)[None, :]                # output position
    tap = p_idx - l_idx + pad
    valid = (tap >= 0) & (tap < K) & (l_idx < L)
    w_full = jnp.asarray(conv_w, jnp.float32)[:, jnp.clip(tap, 0, K - 1)]
    w_band = jnp.where(valid[None], w_full, 0.0).astype(in_dtype)
    w_band = w_band.reshape(C * L, Lo)

    gamma_p = jnp.pad(jnp.asarray(ln_gamma, jnp.float32), (0, Lo - L)).reshape(1, Lo)
    beta_p = jnp.pad(jnp.asarray(ln_beta, jnp.float32), (0, Lo - L)).reshape(1, Lo)

    x_flat = x.reshape(B, C * L)                   # free bitcast, no pad/upcast
    if Bp != B:
        x_flat = jnp.pad(x_flat, ((0, Bp - B), (0, 0)))

    grid = (Bp // bt,)
    kernel = functools.partial(_cluster_kernel, l_valid=L, eps=eps)

    out = pl.pallas_call(
        kernel,
        out_shape=jax.ShapeDtypeStruct((Bp, Lo), jnp.float32),
        grid=grid,
        in_specs=[
            pl.BlockSpec((bt, C * L), lambda i: (i, 0)),    # streamed input
            pl.BlockSpec((C * L, Lo), lambda i: (0, 0)),    # resident weight
            pl.BlockSpec((1, Lo), lambda i: (0, 0)),        # resident gamma
            pl.BlockSpec((1, Lo), lambda i: (0, 0)),        # resident beta
        ],
        out_specs=pl.BlockSpec((bt, Lo), lambda i: (i, 0)),
        compiler_params=pltpu.CompilerParams(
            dimension_semantics=("parallel",),
            vmem_limit_bytes=vmem_limit,
        ),
        cost_estimate=pl.CostEstimate(
            flops=2 * Bp * (C * L) * Lo + 8 * Bp * Lo,
            transcendentals=Bp * Lo,
            bytes_accessed=(itemsize * Bp * C * L + 4 * Bp * Lo
                            + itemsize * C * L * Lo + 8 * Lo),
        ),
    )(x_flat, w_band, gamma_p, beta_p)

    return out[:B, :L].reshape(B, 1, L)


def init_params(key, node_num, node_length, kernel_size=15):
    """Deterministic synthetic init mirroring PyTorch Conv1d / LayerNorm defaults."""
    kw, kb = jax.random.split(key)
    fan_in = node_num * kernel_size
    bound = 1.0 / math.sqrt(fan_in)
    conv_w = jax.random.uniform(kw, (node_num, kernel_size), jnp.float32,
                                -bound, bound)
    conv_b = jax.random.uniform(kb, (1,), jnp.float32, -bound, bound)
    ln_gamma = jnp.ones((node_length,), jnp.float32)
    ln_beta = jnp.zeros((node_length,), jnp.float32)
    return conv_w, conv_b, ln_gamma, ln_beta


if __name__ == "__main__":
    key = jax.random.PRNGKey(0)
    k_x, k_p = jax.random.split(key)

    B, node_num, node_length, K = 2, 16, 64, 15
    x = jax.random.normal(k_x, (B, node_num, node_length), jnp.float32)
    conv_w, conv_b, ln_gamma, ln_beta = init_params(k_p, node_num, node_length, K)

    out = community_local_cluster(x, conv_w, conv_b, ln_gamma, ln_beta)
    out = jax.block_until_ready(out)
    assert out.shape == (B, 1, node_length)

    # Pure-JAX reference of the same forward (eval-mode dropout = identity).
    pad = K // 2
    x_pad = jnp.pad(x, ((0, 0), (0, 0), (pad, pad)))
    cols = jnp.stack([x_pad[:, :, k:k + node_length] for k in range(K)], axis=-1)
    conv_ref = jnp.einsum("bclk,ck->bl", cols, conv_w) + conv_b[0]
    mean = conv_ref.mean(-1, keepdims=True)
    var = ((conv_ref - mean) ** 2).mean(-1, keepdims=True)
    ln = (conv_ref - mean) * jax.lax.rsqrt(var + 1e-5) * ln_gamma + ln_beta
    ref = jnp.tanh(ln).reshape(B, 1, node_length)

    assert jnp.allclose(out, ref, atol=1e-4, rtol=1e-4), \
        float(jnp.max(jnp.abs(out - ref)))

    print("KERNEL_OK")
</pallas_src>

<mosaic_0001>
module attributes {stable_mosaic.version = 11 : i64} {
  func.func @_cluster_kernel(%arg0: i32, %arg1: memref<2x1024xf32, #tpu.memory_space<vmem>>, %arg2: memref<1024x128xf32, #tpu.memory_space<vmem>>, %arg3: memref<1x128xf32, #tpu.memory_space<vmem>>, %arg4: memref<1x128xf32, #tpu.memory_space<vmem>>, %arg5: memref<2x128xf32, #tpu.memory_space<vmem>>) attributes {dimension_semantics = [#tpu.dimension_semantics<parallel>], iteration_bounds = array<i64: 1>, scalar_prefetch = 0 : i64, scratch_operands = 0 : i64, tpu.core_type = #tpu.core_type<tc>, window_params = [{transform_indices = @transform_0, window_bounds = array<i64: 2, 1024>}, {pipeline_mode = #tpu.pipeline_mode<synchronous>, transform_indices = @transform_1, window_bounds = array<i64: 1024, 128>}, {pipeline_mode = #tpu.pipeline_mode<synchronous>, transform_indices = @transform_2, window_bounds = array<i64: 1, 128>}, {pipeline_mode = #tpu.pipeline_mode<synchronous>, transform_indices = @transform_3, window_bounds = array<i64: 1, 128>}, {transform_indices = @transform_4, window_bounds = array<i64: 2, 128>}]} {
    %c0 = arith.constant 0 : index
    %c0_0 = arith.constant 0 : index
    %0 = vector.load %arg1[%c0, %c0_0] : memref<2x1024xf32, #tpu.memory_space<vmem>>, vector<2x1024xf32>
    %c0_1 = arith.constant 0 : index
    %c0_2 = arith.constant 0 : index
    %1 = vector.load %arg2[%c0_1, %c0_2] : memref<1024x128xf32, #tpu.memory_space<vmem>>, vector<1024x128xf32>
    %cst = arith.constant dense<0.000000e+00> : vector<2x128xf32>
    %2 = tpu.matmul %0, %1, %cst {dimension_numbers = #tpu.dot_dimension_numbers<[1], [0], [0], [1], [0, 0, 1, 1], [], []>} : vector<2x1024xf32>, vector<1024x128xf32>, vector<2x128xf32> -> vector<2x128xf32>
    %3 = tpu.iota {dimensions = array<i32: 1>} : vector<2x128xi32>
    %c64_i32 = arith.constant 64 : i32
    %4 = vector.broadcast %c64_i32 : i32 to vector<2x128xi32>
    %5 = arith.cmpi slt, %3, %4 : vector<2x128xi32>
    %cst_3 = arith.constant 0.000000e+00 : f32
    %6 = vector.broadcast %cst_3 : f32 to vector<2x128xf32>
    %7 = arith.select %5, %2, %6 : vector<2x128xi1>, vector<2x128xf32>
    %cst_4 = arith.constant dense<0.000000e+00> : vector<2xf32>
    %8 = vector.multi_reduction <add>, %7, %cst_4 [1] : vector<2x128xf32> to vector<2xf32>
    %9 = vector.shape_cast %8 : vector<2xf32> to vector<2x1xf32>
    %10 = arith.mulf %7, %7 : vector<2x128xf32>
    %cst_5 = arith.constant dense<0.000000e+00> : vector<2xf32>
    %11 = vector.multi_reduction <add>, %10, %cst_5 [1] : vector<2x128xf32> to vector<2xf32>
    %12 = vector.shape_cast %11 : vector<2xf32> to vector<2x1xf32>
    %cst_6 = arith.constant 1.562500e-02 : f32
    %13 = vector.broadcast %cst_6 : f32 to vector<2x1xf32>
    %14 = arith.mulf %9, %13 : vector<2x1xf32>
    %cst_7 = arith.constant 1.562500e-02 : f32
    %15 = vector.broadcast %cst_7 : f32 to vector<2x1xf32>
    %16 = arith.mulf %12, %15 : vector<2x1xf32>
    %17 = arith.mulf %14, %14 : vector<2x1xf32>
    %18 = arith.subf %16, %17 : vector<2x1xf32>
    %19 = vector.broadcast %14 : vector<2x1xf32> to vector<2x128xf32>
    %20 = arith.subf %2, %19 : vector<2x128xf32>
    %cst_8 = arith.constant 9.99999974E-6 : f32
    %21 = vector.broadcast %cst_8 : f32 to vector<2x1xf32>
    %22 = arith.addf %18, %21 : vector<2x1xf32>
    %23 = math.rsqrt %22 : vector<2x1xf32>
    %24 = vector.broadcast %23 : vector<2x1xf32> to vector<2x128xf32>
    %25 = arith.mulf %20, %24 : vector<2x128xf32>
    %c0_9 = arith.constant 0 : index
    %c0_10 = arith.constant 0 : index
    %26 = vector.load %arg3[%c0_9, %c0_10] : memref<1x128xf32, #tpu.memory_space<vmem>>, vector<1x128xf32>
    %27 = vector.broadcast %26 : vector<1x128xf32> to vector<2x128xf32>
    %28 = arith.mulf %25, %27 : vector<2x128xf32>
    %c0_11 = arith.constant 0 : index
    %c0_12 = arith.constant 0 : index
    %29 = vector.load %arg4[%c0_11, %c0_12] : memref<1x128xf32, #tpu.memory_space<vmem>>, vector<1x128xf32>
    %30 = vector.broadcast %29 : vector<1x128xf32> to vector<2x128xf32>
    %31 = arith.addf %28, %30 : vector<2x128xf32>
    %32 = math.tanh %31 : vector<2x128xf32>
    %c0_13 = arith.constant 0 : index
    %c0_14 = arith.constant 0 : index
    %33 = vector.load %arg5[%c0_13, %c0_14] : memref<2x128xf32, #tpu.memory_space<vmem>>, vector<2x128xf32>
    tpu.vector_store %arg5[%c0_13, %c0_14], %32 {strides = array<i32>} : memref<2x128xf32, #tpu.memory_space<vmem>>, vector<2x128xf32>,
    return
  }
  func.func @transform_0(%arg0: i32) -> (i32, i32) {
    %c0_i32 = arith.constant 0 : i32
    %c0_i32_0 = arith.constant 0 : i32
    return %arg0, %c0_i32 : i32, i32
  }
  func.func @transform_1(%arg0: i32) -> (i32, i32) {
    %c0_i32 = arith.constant 0 : i32
    %c0_i32_0 = arith.constant 0 : i32
    %c0_i32_1 = arith.constant 0 : i32
    return %c0_i32, %c0_i32_0 : i32, i32
  }
  func.func @transform_2(%arg0: i32) -> (i32, i32) {
    %c0_i32 = arith.constant 0 : i32
    %c0_i32_0 = arith.constant 0 : i32
    %c0_i32_1 = arith.constant 0 : i32
    return %c0_i32, %c0_i32_0 : i32, i32
  }
  func.func @transform_3(%arg0: i32) -> (i32, i32) {
    %c0_i32 = arith.constant 0 : i32
    %c0_i32_0 = arith.constant 0 : i32
    %c0_i32_1 = arith.constant 0 : i32
    return %c0_i32, %c0_i32_0 : i32, i32
  }
  func.func @transform_4(%arg0: i32) -> (i32, i32) {
    %c0_i32 = arith.constant 0 : i32
    %c0_i32_0 = arith.constant 0 : i32
    return %arg0, %c0_i32 : i32, i32
  }
}

</mosaic_0001>

<bundles_post_ra>
// kernel: tpu_custom_call.1
= control target key start
LH: loop header
LB: loop body
LE: loop exit
PB: predicated region body
PF: predicated region fallthrough
CT: control target
= control target key end

     0   :  { %9 = vsyncpa [#allocation3], 0  ;;  %s552_s0 = inlined_call_operand.hbm [shape: f32[2,1024], index: 0, kind: input, shape index: {}]   ;;  %s553_s1 = inlined_call_operand.hbm [shape: f32[1024,128], index: 1, kind: input, shape index: {}]   ;;  %s554_s2 = inlined_call_operand.vmem [shape: f32[1,128], index: 2, kind: input, shape index: {}]   ;;  %s555_s3 = inlined_call_operand.vmem [shape: f32[1,128], index: 3, kind: input, shape index: {}]   ;;  %s556_s4 = inlined_call_operand.hbm [shape: f32[2,128], index: 4, kind: output, shape index: {}]  }
   0x1   :  { %10 = vsyncpa [#allocation6], 0 }
   0x2   :  { %11 = vsyncpa [#allocation4], 0  ;;  %s17_s17 = sshll.u32 %s552_s0, 4  ;;  %s507_s18 = smov [#allocation2]   ;;  %s18_s17 = int_to_ptr.hbm [resolvable:$true] %s17_s17 }
   0x3   :  { %s19_s19 = sshll.u32 %s507_s18, 4  ;;  %s27_s22 = sshll.u32 %s553_s1, 4  ;;  %s20_s19 = int_to_ptr.vmem [resolvable:$true] %s19_s19  ;;  %s28_s22 = int_to_ptr.hbm [resolvable:$true] %s27_s22 }
   0x4   :  { %22 = dma.hbm_to_vmem [thread:$0]  %s18_s17, 256, %s20_s19, [#allocation3]  }
   0x5   :  { %s508_s23 = smov [#allocation5]   ;;  %s509_s25 = smov 128  }
   0x6   :  { %s29_s24 = sshll.u32 %s508_s23, 4  ;;  %s510_s26 = smov 8   ;;  %s30_s24 = int_to_ptr.vmem [resolvable:$true] %s29_s24 }
   0x7   :  { %35 = dma.hbm_to_vmem [thread:$0]  %s28_s22, 16384, %s30_s24, [#allocation6], %s509_s25, %s509_s25, %s510_s26  }
   0x8   :  { %501 = dma.done.wait [#allocation3], 256  }
   0x9   :  { %502 = vsyncadd [#allocation3], 4294967040 }
   0xa   :  { %503 = dma.done.wait [#allocation6], 16384  }
   0xb   :  { %504 = vsyncadd [#allocation6], 4294950912  ;;  %v65_v0 = vld [vmem:[#allocation5 + $0x78] sm:$0xff]  ;;  %v64_v2 = vld [vmem:[#allocation5 + $0x70] sm:$0xff]  ;;  %vm363_vm1 = vcmask 1041408   ;;  %s511_s29 = smov [#allocation7]  }
   0xc   :  { %v97_v1 = vld [vmem:[#allocation5 + $0x178] sm:$0xff]  ;;  %199 = vmatpush.msra.mxu0 %v65_v0  ;;  %v96_v4 = vld [vmem:[#allocation5 + $0x170] sm:$0xff]  ;;  %v63_v6 = vld [vmem:[#allocation5 + $0x68] sm:$0xff]  ;;  %s405_s30 = sshll.u32 %s511_s29, 4  ;;  %s407_s7 = sshll.u32 %s556_s4, 4  ;;  %s406_s30 = int_to_ptr.vmem [resolvable:$true] %s405_s30  ;;  %s408_s7 = int_to_ptr.hbm [resolvable:$true] %s407_s7 }
   0xd   :  { %239 = vmatpush.msra.mxu2 %v97_v1  ;;  %v81_v3 = vld [vmem:[#allocation5 + $0xf8] sm:$0xff]  ;;  %v80_v7 = vld [vmem:[#allocation5 + $0xf0] sm:$0xff]  ;;  %v95_v8 = vld [vmem:[#allocation5 + $0x168] sm:$0xff] }
   0xe   :  { %v113_v5 = vld [vmem:[#allocation5 + $0x1f8] sm:$0xff]  ;;  %219 = vmatpush.msra.mxu1 %v81_v3  ;;  %200 = vmatpush.msra.mxu0 %v64_v2  ;;  %v112_v9 = vld [vmem:[#allocation5 + $0x1f0] sm:$0xff]  ;;  %v79_v10 = vld [vmem:[#allocation5 + $0xe8] sm:$0xff] }
   0xf   :  { %259 = vmatpush.msra.mxu3 %v113_v5  ;;  %240 = vmatpush.msra.mxu2 %v96_v4  ;;  %v62_v11 = vld [vmem:[#allocation5 + $0x60] sm:$0xff]  ;;  %v111_v13 = vld [vmem:[#allocation5 + $0x1e8] sm:$0xff]  ;;  %v61_v16 = vld [vmem:[#allocation5 + $0x58] sm:$0xff] }
  0x10   :  { %220 = vmatpush.msra.mxu1 %v80_v7  ;;  %v94_v12 = vld [vmem:[#allocation5 + $0x160] sm:$0xff]  ;;  %201 = vmatpush.msra.mxu0 %v63_v6  ;;  %v93_v17 = vld [vmem:[#allocation5 + $0x158] sm:$0xff]  ;;  %v60_v20 = vld [vmem:[#allocation5 + $0x50] sm:$0xff] }
  0x11   :  { %260 = vmatpush.msra.mxu3 %v112_v9  ;;  %241 = vmatpush.msra.mxu2 %v95_v8  ;;  %v78_v14 = vld [vmem:[#allocation5 + $0xe0] sm:$0xff]  ;;  %v77_v18 = vld [vmem:[#allocation5 + $0xd8] sm:$0xff]  ;;  %v92_v21 = vld [vmem:[#allocation5 + $0x150] sm:$0xff] }
  0x12   :  { %v110_v15 = vld [vmem:[#allocation5 + $0x1e0] sm:$0xff]  ;;  %221 = vmatpush.msra.mxu1 %v79_v10  ;;  %202 = vmatpush.msra.mxu0 %v62_v11  ;;  %v109_v19 = vld [vmem:[#allocation5 + $0x1d8] sm:$0xff]  ;;  %v76_v22 = vld [vmem:[#allocation5 + $0xd0] sm:$0xff] }
  0x13   :  { %261 = vmatpush.msra.mxu3 %v111_v13  ;;  %242 = vmatpush.msra.mxu2 %v94_v12  ;;  %v108_v23 = vld [vmem:[#allocation5 + $0x1d0] sm:$0xff]  ;;  %v59_v24 = vld [vmem:[#allocation5 + $0x48] sm:$0xff]  ;;  %v58_v28 = vld [vmem:[#allocation5 + $0x40] sm:$0xff] }
  0x14   :  { %222 = vmatpush.msra.mxu1 %v78_v14  ;;  %203 = vmatpush.msra.mxu0 %v61_v16  ;;  %v91_v25 = vld [vmem:[#allocation5 + $0x148] sm:$0xff]  ;;  %v90_v29 = vld [vmem:[#allocation5 + $0x140] sm:$0xff]  ;;  %v57_v32 = vld [vmem:[#allocation5 + $0x38] sm:$0xff] }
  0x15   :  { %262 = vmatpush.msra.mxu3 %v110_v15  ;;  %243 = vmatpush.msra.mxu2 %v93_v17  ;;  %v75_v26 = vld [vmem:[#allocation5 + $0xc8] sm:$0xff]  ;;  %v74_v30 = vld [vmem:[#allocation5 + $0xc0] sm:$0xff]  ;;  %v89_v33 = vld [vmem:[#allocation5 + $0x138] sm:$0xff] }
  0x16   :  { %223 = vmatpush.msra.mxu1 %v77_v18  ;;  %204 = vmatpush.msra.mxu0 %v60_v20  ;;  %v107_v27 = vld [vmem:[#allocation5 + $0x1c8] sm:$0xff]  ;;  %v106_v31 = vld [vmem:[#allocation5 + $0x1c0] sm:$0xff]  ;;  %v73_v34 = vld [vmem:[#allocation5 + $0xb8] sm:$0xff] }
  0x17   :  { %263 = vmatpush.msra.mxu3 %v109_v19  ;;  %244 = vmatpush.msra.mxu2 %v92_v21  ;;  %v105_v35 = vld [vmem:[#allocation5 + $0x1b8] sm:$0xff]  ;;  %v56_v36 = vld [vmem:[#allocation5 + $0x30] sm:$0xff]  ;;  %v55_v40 = vld [vmem:[#allocation5 + $0x28] sm:$0xff] }
  0x18   :  { %224 = vmatpush.msra.mxu1 %v76_v22  ;;  %205 = vmatpush.msra.mxu0 %v59_v24  ;;  %v88_v37 = vld [vmem:[#allocation5 + $0x130] sm:$0xff]  ;;  %v87_v41 = vld [vmem:[#allocation5 + $0x128] sm:$0xff]  ;;  %v54_v44 = vld [vmem:[#allocation5 + $0x20] sm:$0xff] }
  0x19   :  { %264 = vmatpush.msra.mxu3 %v108_v23  ;;  %245 = vmatpush.msra.mxu2 %v91_v25  ;;  %v72_v38 = vld [vmem:[#allocation5 + $0xb0] sm:$0xff]  ;;  %v71_v42 = vld [vmem:[#allocation5 + $0xa8] sm:$0xff]  ;;  %v86_v45 = vld [vmem:[#allocation5 + $0x120] sm:$0xff] }
  0x1a   :  { %225 = vmatpush.msra.mxu1 %v75_v26  ;;  %206 = vmatpush.msra.mxu0 %v58_v28  ;;  %v104_v39 = vld [vmem:[#allocation5 + $0x1b0] sm:$0xff]  ;;  %v103_v43 = vld [vmem:[#allocation5 + $0x1a8] sm:$0xff]  ;;  %v70_v46 = vld [vmem:[#allocation5 + $0xa0] sm:$0xff] }
  0x1b   :  { %265 = vmatpush.msra.mxu3 %v107_v27  ;;  %246 = vmatpush.msra.mxu2 %v90_v29  ;;  %v102_v47 = vld [vmem:[#allocation5 + $0x1a0] sm:$0xff]  ;;  %v53_v48 = vld [vmem:[#allocation5 + $0x18] sm:$0xff]  ;;  %v52_v52 = vld [vmem:[#allocation5 + $0x10] sm:$0xff] }
  0x1c   :  { %226 = vmatpush.msra.mxu1 %v74_v30  ;;  %207 = vmatpush.msra.mxu0 %v57_v32  ;;  %v85_v49 = vld [vmem:[#allocation5 + $0x118] sm:$0xff]  ;;  %v84_v53 = vld [vmem:[#allocation5 + $0x110] sm:$0xff]  ;;  %v51_v56 = vld [vmem:[#allocation5 + $0x8] sm:$0xff] }
  0x1d   :  { %266 = vmatpush.msra.mxu3 %v106_v31  ;;  %247 = vmatpush.msra.mxu2 %v89_v33  ;;  %v69_v50 = vld [vmem:[#allocation5 + $0x98] sm:$0xff]  ;;  %v68_v54 = vld [vmem:[#allocation5 + $0x90] sm:$0xff]  ;;  %v83_v57 = vld [vmem:[#allocation5 + $0x108] sm:$0xff] }
  0x1e   :  { %227 = vmatpush.msra.mxu1 %v73_v34  ;;  %208 = vmatpush.msra.mxu0 %v56_v36  ;;  %v101_v51 = vld [vmem:[#allocation5 + $0x198] sm:$0xff]  ;;  %v100_v55 = vld [vmem:[#allocation5 + $0x190] sm:$0xff]  ;;  %v67_v58 = vld [vmem:[#allocation5 + $0x88] sm:$0xff] }
  0x1f   :  { %267 = vmatpush.msra.mxu3 %v105_v35  ;;  %248 = vmatpush.msra.mxu2 %v88_v37  ;;  %v99_v59 = vld [vmem:[#allocation5 + $0x188] sm:$0xff]  ;;  %v50_v60 = vld [vmem:[#allocation5] sm:$0xff]  ;;  %v129_v62 = vld [vmem:[#allocation5 + $0x278] sm:$0xff] }
  0x20   :  { %228 = vmatpush.msra.mxu1 %v72_v38  ;;  %209 = vmatpush.msra.mxu0 %v55_v40  ;;  %v82_v61 = vld [vmem:[#allocation5 + $0x100] sm:$0xff]  ;;  %v161_v63 = vld [vmem:[#allocation5 + $0x378] sm:$0xff]  ;;  %v128_v2 = vld [vmem:[#allocation5 + $0x270] sm:$0xff] }
  0x21   :  { %268 = vmatpush.msra.mxu3 %v104_v39  ;;  %249 = vmatpush.msra.mxu2 %v87_v41  ;;  %v66_v0 = vld [vmem:[#allocation5 + $0x80] sm:$0xff]  ;;  %v145_v3 = vld [vmem:[#allocation5 + $0x2f8] sm:$0xff]  ;;  %v160_v4 = vld [vmem:[#allocation5 + $0x370] sm:$0xff] }
  0x22   :  { %229 = vmatpush.msra.mxu1 %v71_v42  ;;  %210 = vmatpush.msra.mxu0 %v54_v44  ;;  %v98_v1 = vld [vmem:[#allocation5 + $0x180] sm:$0xff]  ;;  %v177_v5 = vld [vmem:[#allocation5 + $0x3f8] sm:$0xff]  ;;  %v127_v6 = vld [vmem:[#allocation5 + $0x268] sm:$0xff] }
  0x23   :  { %269 = vmatpush.msra.mxu3 %v103_v43  ;;  %250 = vmatpush.msra.mxu2 %v86_v45  ;;  %v144_v7 = vld [vmem:[#allocation5 + $0x2f0] sm:$0xff]  ;;  %v159_v8 = vld [vmem:[#allocation5 + $0x368] sm:$0xff]  ;;  %v126_v10 = vld [vmem:[#allocation5 + $0x260] sm:$0xff] }
  0x24   :  { %230 = vmatpush.msra.mxu1 %v70_v46  ;;  %211 = vmatpush.msra.mxu0 %v53_v48  ;;  %v176_v9 = vld [vmem:[#allocation5 + $0x3f0] sm:$0xff]  ;;  %v143_v11 = vld [vmem:[#allocation5 + $0x2e8] sm:$0xff]  ;;  %v158_v13 = vld [vmem:[#allocation5 + $0x360] sm:$0xff] }
  0x25   :  { %270 = vmatpush.msra.mxu3 %v102_v47  ;;  %251 = vmatpush.msra.mxu2 %v85_v49  ;;  %v48_v12 = vld [vmem:[#allocation2] sm:$0xff]  ;;  %v175_v14 = vld [vmem:[#allocation5 + $0x3e8] sm:$0xff]  ;;  %v125_v15 = vld [vmem:[#allocation5 + $0x258] sm:$0xff] }
  0x26   :  { %231 = vmatpush.msra.mxu1 %v69_v50  ;;  %212 = vmatpush.msra.mxu0 %v52_v52  ;;  %180 = vst [vmem:[#allocation1] ss:$4 sm:$0xff] %v48_v12  ;;  %v142_v16 = vld [vmem:[#allocation5 + $0x2e0] sm:$0xff]  ;;  %v157_v17 = vld [vmem:[#allocation5 + $0x358] sm:$0xff]  ;;  %v124_v19 = vld [vmem:[#allocation5 + $0x250] sm:$0xff] }
  0x27   :  { %271 = vmatpush.msra.mxu3 %v101_v51  ;;  %252 = vmatpush.msra.mxu2 %v84_v53  ;;  %v174_v18 = vld [vmem:[#allocation5 + $0x3e0] sm:$0xff]  ;;  %v141_v20 = vld [vmem:[#allocation5 + $0x2d8] sm:$0xff]  ;;  %v156_v21 = vld [vmem:[#allocation5 + $0x350] sm:$0xff] }
  0x28   :  { %232 = vmatpush.msra.mxu1 %v68_v54  ;;  %213 = vmatpush.msra.mxu0 %v51_v56  ;;  %v173_v22 = vld [vmem:[#allocation5 + $0x3d8] sm:$0xff]  ;;  %v123_v23 = vld [vmem:[#allocation5 + $0x248] sm:$0xff]  ;;  %v140_v24 = vld [vmem:[#allocation5 + $0x2d0] sm:$0xff] }
  0x29   :  { %272 = vmatpush.msra.mxu3 %v100_v55  ;;  %253 = vmatpush.msra.mxu2 %v83_v57  ;;  %v155_v25 = vld [vmem:[#allocation5 + $0x348] sm:$0xff]  ;;  %v172_v26 = vld [vmem:[#allocation5 + $0x3d0] sm:$0xff]  ;;  %v49_v27 = vld [vmem:[#allocation2 + $0x8] sm:$0xff] }
  0x2a   :  { %233 = vmatpush.msra.mxu1 %v67_v58  ;;  %214 = vmatpush.msra.mxu0 %v50_v60  ;;  %v122_v28 = vld [vmem:[#allocation5 + $0x240] sm:$0xff]  ;;  %v139_v29 = vld [vmem:[#allocation5 + $0x2c8] sm:$0xff]  ;;  %v121_v32 = vld [vmem:[#allocation5 + $0x238] sm:$0xff]  ;;  %182 = vst [vmem:[#allocation1 + $0x20] ss:$4 sm:$0xff] %v49_v27 }
  0x2b   :  { %273 = vmatpush.msra.mxu3 %v99_v59  ;;  %254 = vmatpush.msra.mxu2 %v82_v61  ;;  %v154_v30 = vld [vmem:[#allocation5 + $0x340] sm:$0xff]  ;;  %v171_v31 = vld [vmem:[#allocation5 + $0x3c8] sm:$0xff]  ;;  %v153_v34 = vld [vmem:[#allocation5 + $0x338] sm:$0xff] }
  0x2c   :  { %279 = vmatpush.msrb.mxu0 %v129_v62  ;;  %234 = vmatpush.msra.mxu1 %v66_v0  ;;  %v138_v33 = vld [vmem:[#allocation5 + $0x2c0] sm:$0xff]  ;;  %v120_v36 = vld [vmem:[#allocation5 + $0x230] sm:$0xff]  ;;  %v137_v37 = vld [vmem:[#allocation5 + $0x2b8] sm:$0xff] }
  0x2d   :  { %319 = vmatpush.msrb.mxu2 %v161_v63  ;;  %274 = vmatpush.msra.mxu3 %v98_v1  ;;  %v170_v35 = vld [vmem:[#allocation5 + $0x3c0] sm:$0xff]  ;;  %v152_v38 = vld [vmem:[#allocation5 + $0x330] sm:$0xff]  ;;  %v169_v39 = vld [vmem:[#allocation5 + $0x3b8] sm:$0xff] }
  0x2e   :  { %280 = vmatpush.msrb.mxu0 %v128_v2  ;;  %299 = vmatpush.msrb.mxu1 %v145_v3  ;;  %v119_v40 = vld [vmem:[#allocation5 + $0x228] sm:$0xff]  ;;  %v136_v41 = vld [vmem:[#allocation5 + $0x2b0] sm:$0xff]  ;;  %v185_v44 = vld.sshfl [vmem:[#allocation1 + $0x10] sm:$0xff pattern:$0x73625140] }
  0x2f   :  { %320 = vmatpush.msrb.mxu2 %v160_v4  ;;  %339 = vmatpush.msrb.mxu3 %v177_v5  ;;  %v151_v42 = vld [vmem:[#allocation5 + $0x328] sm:$0xff]  ;;  %v168_v43 = vld [vmem:[#allocation5 + $0x3b0] sm:$0xff]  ;;  %v118_v45 = vld [vmem:[#allocation5 + $0x220] sm:$0xff] }
  0x30   :  { %281 = vmatpush.msrb.mxu0 %v127_v6  ;;  %300 = vmatpush.msrb.mxu1 %v144_v7  ;;  %v135_v46 = vld [vmem:[#allocation5 + $0x2a8] sm:$0xff]  ;;  %v150_v47 = vld [vmem:[#allocation5 + $0x320] sm:$0xff]  ;;  %v117_v51 = vld [vmem:[#allocation5 + $0x218] sm:$0xff] }
  0x31   :  { %321 = vmatpush.msrb.mxu2 %v159_v8  ;;  %340 = vmatpush.msrb.mxu3 %v176_v9  ;;  %v167_v48 = vld [vmem:[#allocation5 + $0x3a8] sm:$0xff]  ;;  %v186_v50 = vld.sshfl [vmem:[#allocation1 + $0x18] sm:$0xff pattern:$0x73625140]  ;;  %v149_v53 = vld [vmem:[#allocation5 + $0x318] sm:$0xff] }
  0x32   :  { %282 = vmatpush.msrb.mxu0 %v126_v10  ;;  %301 = vmatpush.msrb.mxu1 %v143_v11  ;;  %v183_v49 = vld.sshfl [vmem:[#allocation1] sm:$0xff pattern:$0x73625140]  ;;  %v134_v52 = vld [vmem:[#allocation5 + $0x2a0] sm:$0xff]  ;;  %v116_v56 = vld [vmem:[#allocation5 + $0x210] sm:$0xff] }
  0x33   :  { %322 = vmatpush.msrb.mxu2 %v158_v13  ;;  %341 = vmatpush.msrb.mxu3 %v175_v14  ;;  %v166_v54 = vld [vmem:[#allocation5 + $0x3a0] sm:$0xff]  ;;  %v184_v55 = vld.sshfl [vmem:[#allocation1 + $0x8] sm:$0xff pattern:$0x73625140]  ;;  %v133_v57 = vld [vmem:[#allocation5 + $0x298] sm:$0xff] }
  0x34   :  { %283 = vmatpush.msrb.mxu0 %v125_v15  ;;  %302 = vmatpush.msrb.mxu1 %v142_v16  ;;  %v148_v58 = vld [vmem:[#allocation5 + $0x310] sm:$0xff]  ;;  %v165_v59 = vld [vmem:[#allocation5 + $0x398] sm:$0xff]  ;;  %v115_v60 = vld [vmem:[#allocation5 + $0x208] sm:$0xff] }
  0x35   :  { %323 = vmatpush.msrb.mxu2 %v157_v17  ;;  %342 = vmatpush.msrb.mxu3 %v174_v18  ;;  %v132_v61 = vld [vmem:[#allocation5 + $0x290] sm:$0xff]  ;;  %v147_v62 = vld [vmem:[#allocation5 + $0x308] sm:$0xff]  ;;  %v114_v0 = vld [vmem:[#allocation5 + $0x200] sm:$0xff]  ;;  %v359_v18 = vlaneseq }
  0x36   :  { %284 = vmatpush.msrb.mxu0 %v124_v19  ;;  %303 = vmatpush.msrb.mxu1 %v141_v20  ;;  %v164_v63 = vld [vmem:[#allocation5 + $0x390] sm:$0xff]  ;;  %v131_v1 = vld [vmem:[#allocation5 + $0x288] sm:$0xff]  ;;  %v146_v2 = vld [vmem:[#allocation5 + $0x300] sm:$0xff] }
  0x37   :  { %324 = vmatpush.msrb.mxu2 %v156_v21  ;;  %343 = vmatpush.msrb.mxu3 %v173_v22  ;;  %v163_v3 = vld [vmem:[#allocation5 + $0x388] sm:$0xff]  ;;  %v189_v5 = vld.sshfl [vmem:[#allocation1 + $0x30] sm:$0xff pattern:$0x73625140]  ;;  %v130_v6 = vld [vmem:[#allocation5 + $0x280] sm:$0xff]  ;;  %v360_v21 = vand.u32 127, %v359_v18 }
  0x38   :  { %285 = vmatpush.msrb.mxu0 %v123_v23  ;;  %304 = vmatpush.msrb.mxu1 %v140_v24  ;;  %v187_v4 = vld.sshfl [vmem:[#allocation1 + $0x20] sm:$0xff pattern:$0x73625140]  ;;  %v162_v7 = vld [vmem:[#allocation5 + $0x380] sm:$0xff] }
  0x39   :  { %325 = vmatpush.msrb.mxu2 %v155_v25  ;;  %344 = vmatpush.msrb.mxu3 %v172_v26  ;;  %v188_v8 = vld.sshfl [vmem:[#allocation1 + $0x28] sm:$0xff pattern:$0x73625140]  ;;  %v190_v9 = vld.sshfl [vmem:[#allocation1 + $0x38] sm:$0xff pattern:$0x73625140] }
  0x3a   :  { %286 = vmatpush.msrb.mxu0 %v122_v28  ;;  %305 = vmatpush.msrb.mxu1 %v139_v29  ;;  %vm361_vm0 = vcmp.lt.s32.totalorder %v360_v21, 64 }
  0x3b   :  { %326 = vmatpush.msrb.mxu2 %v154_v30  ;;  %345 = vmatpush.msrb.mxu3 %v171_v31 }
  0x3c   :  { %287 = vmatpush.msrb.mxu0 %v121_v32  ;;  %306 = vmatpush.msrb.mxu1 %v138_v33 }
  0x3d   :  { %327 = vmatpush.msrb.mxu2 %v153_v34  ;;  %346 = vmatpush.msrb.mxu3 %v170_v35 }
  0x3e   :  { %288 = vmatpush.msrb.mxu0 %v120_v36  ;;  %307 = vmatpush.msrb.mxu1 %v137_v37 }
  0x3f   :  { %328 = vmatpush.msrb.mxu2 %v152_v38  ;;  %347 = vmatpush.msrb.mxu3 %v169_v39 }
  0x40   :  { %289 = vmatpush.msrb.mxu0 %v119_v40  ;;  %308 = vmatpush.msrb.mxu1 %v136_v41 }
  0x41   :  { %329 = vmatpush.msrb.mxu2 %v151_v42  ;;  %348 = vmatpush.msrb.mxu3 %v168_v43 }
  0x42   :  { %255 = vmatmul.f32.vlgmr.msra.gmra.mxu2 %v185_v44  ;;  %290 = vmatpush.msrb.mxu0 %v118_v45  ;;  %v423_v45 = vld [vmem:[%s554_s2] ss:$0 sm:$0xff] }
  0x43   :  { %309 = vmatpush.msrb.mxu1 %v135_v46  ;;  %330 = vmatpush.msrb.mxu2 %v150_v47 }
  0x44   :  { %349 = vmatpush.msrb.mxu3 %v167_v48  ;;  %215 = vmatmul.f32.vlgmr.msra.gmra.mxu0 %v183_v49  ;;  %v424_v48 = vld [vmem:[%s555_s3] ss:$0 sm:$0xff] }
  0x45   :  { %275 = vmatmul.f32.vlgmr.msra.gmra.mxu3 %v186_v50  ;;  %291 = vmatpush.msrb.mxu0 %v117_v51 }
  0x46   :  { %310 = vmatpush.msrb.mxu1 %v134_v52  ;;  %331 = vmatpush.msrb.mxu2 %v149_v53 }
  0x47   :  { %350 = vmatpush.msrb.mxu3 %v166_v54  ;;  %235 = vmatmul.f32.vlgmr.msra.gmra.mxu1 %v184_v55 }
  0x48   :  { %292 = vmatpush.msrb.mxu0 %v116_v56  ;;  %311 = vmatpush.msrb.mxu1 %v133_v57 }
  0x49   :  { %332 = vmatpush.msrb.mxu2 %v148_v58  ;;  %351 = vmatpush.msrb.mxu3 %v165_v59 }
  0x4a   :  { %293 = vmatpush.msrb.mxu0 %v115_v60  ;;  %312 = vmatpush.msrb.mxu1 %v132_v61 }
  0x4b   :  { %333 = vmatpush.msrb.mxu2 %v147_v62  ;;  %352 = vmatpush.msrb.mxu3 %v164_v63 }
  0x4c   :  { %294 = vmatpush.msrb.mxu0 %v114_v0  ;;  %313 = vmatpush.msrb.mxu1 %v131_v1 }
  0x4d   :  { %334 = vmatpush.msrb.mxu2 %v146_v2  ;;  %353 = vmatpush.msrb.mxu3 %v163_v3 }
  0x4e   :  { %295 = vmatmul.f32.vlgmr.msrb.gmra.mxu0 %v187_v4  ;;  %335 = vmatmul.f32.vlgmr.msrb.gmra.mxu2 %v189_v5 }
  0x4f   :  { %314 = vmatpush.msrb.mxu1 %v130_v6  ;;  %354 = vmatpush.msrb.mxu3 %v162_v7 }
  0x50   :  { %315 = vmatmul.f32.vlgmr.msrb.gmra.mxu1 %v188_v8  ;;  %355 = vmatmul.f32.vlgmr.msrb.gmra.mxu3 %v190_v9 }
  0xc1   :  { %v216_v10 = vpop.f32.mrf.mxu0 }
  0xc4   :  { %v236_v11 = vpop.f32.mrf.mxu1 }
  0xc5   :  { %v237_v12 = vadd.f32 %v236_v11, %v216_v10  ;;  %v256_v13 = vpop.f32.mrf.mxu2 }
  0xc7   :  { %v257_v14 = vadd.f32 %v256_v13, %v237_v12 }
  0xc8   :  { %v276_v15 = vpop.f32.mrf.mxu3 }
  0xc9   :  { %v277_v16 = vadd.f32 %v276_v15, %v257_v14 }
  0xcb   :  { %v296_v17 = vpop.f32.mrf.mxu0 }
  0xcc   :  { %v297_v19 = vadd.f32 %v296_v17, %v277_v16 }
  0xcd   :  { %v316_v20 = vpop.f32.mrf.mxu1 }
  0xce   :  { %v317_v22 = vadd.f32 %v316_v20, %v297_v19 }
  0xd1   :  { %v336_v23 = vpop.f32.mrf.mxu2 }
  0xd2   :  { %v337_v24 = vadd.f32 %v336_v23, %v317_v22 }
  0xd3   :  { %v356_v25 = vpop.f32.mrf.mxu3 }
  0xd4   :  { %v357_v26 = vadd.f32 %v356_v25, %v337_v24 }
  0xd6   :  { %v362_v27 = vsel %vm361_vm0, %v357_v26, 0.0 }
  0xd7   :  { %v364_v28 = vsel %vm363_vm1, %v362_v27, 0.0  ;;  %v367_v29 = vmul.f32 %v362_v27, %v362_v27 }
  0xd8   :  { %365 = vadd.xlane.f32.xlu0 %v364_v28 }
  0xd9   :  { %v368_v30 = vsel %vm363_vm1, %v367_v29, 0.0 }
  0xe0   :  { %369 = vadd.xlane.f32.xlu0 %v368_v30 }
 0x14b   :  { %v366_v31 = vpop.xlane.xlu0 %365 }
 0x14c   :  { %v371_v32 = vmul.f32 0.015625, %v366_v31 }
 0x14e   :  { %v373_v34 = vmul.f32 %v371_v32, %v371_v32  ;;  %v375_v44 = vsub.f32 %v357_v26, %v371_v32 }
 0x153   :  { %v370_v33 = vpop.xlane.xlu0 %369 }
 0x154   :  { %v372_v35 = vmul.f32 0.015625, %v370_v33 }
 0x156   :  { %v374_v36 = vsub.f32 %v372_v35, %v373_v34 }
 0x158   :  { %v376_v37 = vadd.f32 1e-05, %v374_v36 }
 0x15a   :  { %425 = vrsqrt.f32 %v376_v37  ;;  %vm383_vm3 = vweird.f32 %v376_v37 }
 0x160   :  { %v426_v38 = vpop.eup %425 }
 0x161   :  { %v378_v39 = vmul.f32 %v426_v38, %v376_v37  ;;  %vm384_vm2 = vweird.f32 %v426_v38 }
 0x162   :  { %vm385_vm4 = vmor %vm383_vm3, %vm384_vm2 }
 0x163   :  { %v379_v40 = vmul.f32 %v426_v38, %v378_v39 }
 0x165   :  { %v380_v41 = vmul.f32 0.5, %v379_v40 }
 0x167   :  { %v381_v42 = vsub.f32 1.5, %v380_v41 }
 0x169   :  { %v382_v43 = vmul.f32 %v426_v38, %v381_v42 }
 0x16b   :  { %v386_v46 = vsel %vm385_vm4, %v426_v38, %v382_v43 }
 0x16c   :  { %v387_v47 = vmul.f32 %v386_v46, %v375_v44 }
 0x16e   :  { %v392_v49 = vmul.f32 %v423_v45, %v387_v47 }
 0x170   :  { %v397_v50 = vadd.f32 %v424_v48, %v392_v49 }
 0x172   :  { %427 = vtanh.f32 %v397_v50 }
 0x178   :  { %v428_v51 = vpop.eup %427 }
 0x179   :  { %399 = vst [vmem:[#allocation7] sm:$0x3] %v428_v51 }
 0x17a   :  { %410 = dma.vmem_to_hbm [thread:$0]  %s406_s30, 32, %s408_s7, [#allocation4]  }
 0x17b   :  { %505 = dma.done.wait [#allocation4], 32  }
 0x17c   :  { %506 = vsyncadd [#allocation4], 4294967264 }
 0x17d   :  { %415 = vsyncpa [#allocation3], 1 }
 0x17e   :  { %416 = vsyncpa [#allocation6], 1 }
 0x17f   :  { %417 = vsyncpa [#allocation4], 1 }

</bundles_post_ra>
